<compile_context>
chip_gen: v5e
topology: v5e:2x2
jax: 0.10.0
libtpu: 0.0.40
codegen_flags: <defaults>
</compile_context>

<pallas_src>
import functools

import jax
import jax.numpy as jnp
from jax.experimental import pallas as pl
from jax.experimental.pallas import tpu as pltpu

input_size = 128
hidden_size = 128
output_size = 1

# Default batch tile; multiple of 256 (v6e/v7x MXU) and 128 (v5e MXU).
# Sweepable 2048-8192 on v6e/v7x; 2048 also fits v5e's 16 MiB scoped VMEM.
TILE_B = 2048


def mlp_kernel(x_ref, w1_ref, b1_ref, w2_ref, b2_ref, o_ref):
    # fc1 + ReLU: bf16 MXU matmul (f32 accumulate); bias / ReLU in f32 on VPU.
    x_bf = x_ref[...].astype(jnp.bfloat16)           # (tile_b, 128)
    h = jnp.dot(x_bf, w1_ref[...], preferred_element_type=jnp.float32)
    h = jnp.maximum(h + b1_ref[...], 0.0)             # (tile_b, H) f32

    # fc2 + Sigmoid: contract (1,H) with (tile_b,H) on H via dot_general so the
    # result is a lane-dense (1, tile_b) row straight off the MXU (no explicit
    # transpose temp, no masked 1-of-128-lane stores).
    z = jax.lax.dot_general(
        w2_ref[...], h.astype(jnp.bfloat16),
        dimension_numbers=(((1,), (1,)), ((), ())),
        preferred_element_type=jnp.float32,
    ) + b2_ref[0, 0]                                   # (1, tile_b)
    o_ref[...] = jax.nn.sigmoid(z).reshape(o_ref.shape).astype(o_ref.dtype)


def _round_up(n, m):
    return ((n + m - 1) // m) * m


@functools.partial(jax.jit, static_argnames=("tile_b",))
def simple_model_forward(x, w1, b1, w2, b2, *, tile_b=TILE_B):
    B = x.shape[0]
    # Keep >= 2 grid steps when possible (v7x megacore), tile a multiple of 256.
    tb = min(tile_b, max(256, _round_up(pl.cdiv(B, 2), 256)))
    num_tiles = pl.cdiv(B, tb)
    b_cover = num_tiles * tb  # grid over-covers; NO jnp.pad / extra HBM pass.

    # Pre-cast resident weights to bf16 once (not per grid step in the kernel).
    w1_bf = w1.astype(jnp.bfloat16)
    w2_bf = w2.astype(jnp.bfloat16)

    cost = pl.CostEstimate(
        flops=2 * b_cover * input_size * hidden_size + 2 * b_cover * hidden_size,
        transcendentals=b_cover,  # one exp per sigmoid
        bytes_accessed=(4 * b_cover * input_size          # x (f32, streamed)
                        + 2 * input_size * hidden_size    # w1 (bf16, resident)
                        + 4 * hidden_size                 # b1
                        + 2 * hidden_size                 # w2 (bf16)
                        + 4                               # b2
                        + 4 * b_cover),                   # output
    )

    out = pl.pallas_call(
        mlp_kernel,
        grid=(num_tiles,),
        out_shape=jax.ShapeDtypeStruct((num_tiles, 1, tb), jnp.float32),
        in_specs=[
            pl.BlockSpec((tb, input_size), lambda i: (i, 0)),       # x: streamed
            pl.BlockSpec((input_size, hidden_size), lambda i: (0, 0)),  # w1 resident
            pl.BlockSpec((1, hidden_size), lambda i: (0, 0)),       # b1 resident
            pl.BlockSpec((1, hidden_size), lambda i: (0, 0)),       # w2 resident
            pl.BlockSpec(memory_space=pltpu.MemorySpace.SMEM),      # b2 scalar
        ],
        out_specs=pl.BlockSpec((1, 1, tb), lambda i: (i, 0, 0)),
        compiler_params=pltpu.CompilerParams(dimension_semantics=("parallel",)),
        cost_estimate=cost,
    )(x, w1_bf, b1, w2_bf, b2)

    # lane-dense (num_tiles, 1, tb) -> PyTorch (B, 1); tail garbage rows (from
    # the partial last block) are discarded here and never read elsewhere.
    return out.reshape(-1)[:B].reshape(B, output_size)


def init_params(key):
    # Deterministic init mimicking nn.Linear's uniform(-1/sqrt(fan_in), 1/sqrt(fan_in)).
    k1, k2, k3, k4 = jax.random.split(key, 4)
    bound1 = 1.0 / jnp.sqrt(jnp.float32(input_size))
    bound2 = 1.0 / jnp.sqrt(jnp.float32(hidden_size))
    # w1 stored (in, out) so the kernel does x @ W directly.
    w1 = jax.random.uniform(k1, (input_size, hidden_size), jnp.float32, -bound1, bound1)
    b1 = jax.random.uniform(k2, (1, hidden_size), jnp.float32, -bound1, bound1)
    # w2 stored (out, in) = (1, hidden), i.e. PyTorch fc2.weight layout.
    w2 = jax.random.uniform(k3, (output_size, hidden_size), jnp.float32, -bound2, bound2)
    b2 = jax.random.uniform(k4, (1, output_size), jnp.float32, -bound2, bound2)
    return w1, b1, w2, b2


if __name__ == "__main__":
    key = jax.random.PRNGKey(0)
    kx, kp = jax.random.split(key)
    B = 300  # exercises the un-padded partial last block and a 2-step grid
    x = jax.random.normal(kx, (B, input_size), dtype=jnp.float32)
    w1, b1, w2, b2 = init_params(kp)

    out = simple_model_forward(x, w1, b1, w2, b2)
    out = jax.block_until_ready(out)

    # reference check in plain JAX (f32); bf16 MXU path => relaxed tolerance
    ref = jax.nn.sigmoid(jnp.maximum(x @ w1 + b1, 0.0) @ w2.T + b2)
    assert out.shape == (B, output_size)
    assert jnp.allclose(out, ref, atol=2e-2, rtol=2e-2), float(jnp.max(jnp.abs(out - ref)))
    print("KERNEL_OK")
</pallas_src>

<mosaic_0001>
module attributes {stable_mosaic.version = 11 : i64} {
  func.func @mlp_kernel(%arg0: i32, %arg1: memref<256x128xf32, #tpu.memory_space<vmem>>, %arg2: memref<128x128xbf16, #tpu.memory_space<vmem>>, %arg3: memref<1x128xf32, #tpu.memory_space<vmem>>, %arg4: memref<1x128xbf16, #tpu.memory_space<vmem>>, %arg5: memref<1x1xf32, #tpu.memory_space<smem>>, %arg6: memref<1x1x256xf32, #tpu.memory_space<vmem>>) attributes {dimension_semantics = [#tpu.dimension_semantics<parallel>], iteration_bounds = array<i64: 2>, scalar_prefetch = 0 : i64, scratch_operands = 0 : i64, tpu.core_type = #tpu.core_type<tc>, window_params = [{transform_indices = @transform_0, window_bounds = array<i64: 256, 128>}, {pipeline_mode = #tpu.pipeline_mode<synchronous>, transform_indices = @transform_1, window_bounds = array<i64: 128, 128>}, {pipeline_mode = #tpu.pipeline_mode<synchronous>, transform_indices = @transform_2, window_bounds = array<i64: 1, 128>}, {pipeline_mode = #tpu.pipeline_mode<synchronous>, transform_indices = @transform_3, window_bounds = array<i64: 1, 128>}, {transform_indices = @transform_4, window_bounds = array<i64: 1, 1>}, {transform_indices = @transform_5, window_bounds = array<i64: 1, 1, 256>}]} {
    %c0 = arith.constant 0 : index
    %c0_0 = arith.constant 0 : index
    %0 = vector.load %arg1[%c0, %c0_0] : memref<256x128xf32, #tpu.memory_space<vmem>>, vector<256x128xf32>
    %1 = arith.truncf %0 : vector<256x128xf32> to vector<256x128xbf16>
    %c0_1 = arith.constant 0 : index
    %c0_2 = arith.constant 0 : index
    %2 = vector.load %arg2[%c0_1, %c0_2] : memref<128x128xbf16, #tpu.memory_space<vmem>>, vector<128x128xbf16>
    %cst = arith.constant dense<0.000000e+00> : vector<256x128xf32>
    %3 = tpu.matmul %1, %2, %cst {dimension_numbers = #tpu.dot_dimension_numbers<[1], [0], [0], [1], [0, 0, 1, 1], [], []>} : vector<256x128xbf16>, vector<128x128xbf16>, vector<256x128xf32> -> vector<256x128xf32>
    %c0_3 = arith.constant 0 : index
    %c0_4 = arith.constant 0 : index
    %4 = vector.load %arg3[%c0_3, %c0_4] : memref<1x128xf32, #tpu.memory_space<vmem>>, vector<1x128xf32>
    %5 = vector.broadcast %4 : vector<1x128xf32> to vector<256x128xf32>
    %6 = arith.addf %3, %5 : vector<256x128xf32>
    %cst_5 = arith.constant 0.000000e+00 : f32
    %7 = vector.broadcast %cst_5 : f32 to vector<256x128xf32>
    %8 = arith.maximumf %6, %7 : vector<256x128xf32>
    %c0_6 = arith.constant 0 : index
    %c0_7 = arith.constant 0 : index
    %9 = vector.load %arg4[%c0_6, %c0_7] : memref<1x128xbf16, #tpu.memory_space<vmem>>, vector<1x128xbf16>
    %10 = arith.truncf %8 : vector<256x128xf32> to vector<256x128xbf16>
    %cst_8 = arith.constant dense<0.000000e+00> : vector<1x256xf32>
    %11 = tpu.matmul %9, %10, %cst_8 {dimension_numbers = #tpu.dot_dimension_numbers<[1], [1], [0], [0], [0, 0, 1, 0], [], []>} : vector<1x128xbf16>, vector<256x128xbf16>, vector<1x256xf32> -> vector<1x256xf32>
    %c0_9 = arith.constant 0 : index
    %c0_10 = arith.constant 0 : index
    %12 = memref.load %arg5[%c0_9, %c0_10] : memref<1x1xf32, #tpu.memory_space<smem>>
    %13 = vector.broadcast %12 : f32 to vector<1x256xf32>
    %14 = arith.addf %11, %13 : vector<1x256xf32>
    %15 = arith.negf %14 : vector<1x256xf32>
    %16 = math.exp %15 : vector<1x256xf32>
    %cst_11 = arith.constant 1.000000e+00 : f32
    %17 = vector.broadcast %cst_11 : f32 to vector<1x256xf32>
    %18 = arith.addf %17, %16 : vector<1x256xf32>
    %19 = arith.divf %17, %18 : vector<1x256xf32>
    %20 = vector.shape_cast %19 : vector<1x256xf32> to vector<1x1x256xf32>
    %c0_12 = arith.constant 0 : index
    %c0_13 = arith.constant 0 : index
    %c0_14 = arith.constant 0 : index
    %21 = vector.load %arg6[%c0_12, %c0_13, %c0_14] : memref<1x1x256xf32, #tpu.memory_space<vmem>>, vector<1x1x256xf32>
    tpu.vector_store %arg6[%c0_12, %c0_13, %c0_14], %20 {strides = array<i32>} : memref<1x1x256xf32, #tpu.memory_space<vmem>>, vector<1x1x256xf32>,
    return
  }
  func.func @transform_0(%arg0: i32) -> (i32, i32) {
    %c0_i32 = arith.constant 0 : i32
    %c0_i32_0 = arith.constant 0 : i32
    return %arg0, %c0_i32 : i32, i32
  }
  func.func @transform_1(%arg0: i32) -> (i32, i32) {
    %c0_i32 = arith.constant 0 : i32
    %c0_i32_0 = arith.constant 0 : i32
    %c0_i32_1 = arith.constant 0 : i32
    return %c0_i32, %c0_i32_0 : i32, i32
  }
  func.func @transform_2(%arg0: i32) -> (i32, i32) {
    %c0_i32 = arith.constant 0 : i32
    %c0_i32_0 = arith.constant 0 : i32
    %c0_i32_1 = arith.constant 0 : i32
    return %c0_i32, %c0_i32_0 : i32, i32
  }
  func.func @transform_3(%arg0: i32) -> (i32, i32) {
    %c0_i32 = arith.constant 0 : i32
    %c0_i32_0 = arith.constant 0 : i32
    %c0_i32_1 = arith.constant 0 : i32
    return %c0_i32, %c0_i32_0 : i32, i32
  }
  func.func @transform_4(%arg0: i32) -> (i32, i32) {
    %c0_i32 = arith.constant 0 : i32
    %c0_i32_0 = arith.constant 0 : i32
    %c0_i32_1 = arith.constant 0 : i32
    return %c0_i32, %c0_i32_0 : i32, i32
  }
  func.func @transform_5(%arg0: i32) -> (i32, i32, i32) {
    %c0_i32 = arith.constant 0 : i32
    %c0_i32_0 = arith.constant 0 : i32
    %c0_i32_1 = arith.constant 0 : i32
    return %arg0, %c0_i32, %c0_i32_0 : i32, i32, i32
  }
}

</mosaic_0001>

<bundles_post_ra>
// kernel: simple_model_forward.1
= control target key start
LH: loop header
LB: loop body
LE: loop exit
PB: predicated region body
PF: predicated region fallthrough
CT: control target
= control target key end

     0   :  { %s1106_s0 = inlined_call_operand.hbm [shape: f32[300,128], index: 0, kind: input, shape index: {}]   ;;  %s1107_s1 = inlined_call_operand.vmem [shape: bf16[128,128], index: 1, kind: input, shape index: {}]   ;;  %s1108_s2 = inlined_call_operand.vmem [shape: f32[1,128], index: 2, kind: input, shape index: {}]   ;;  %s1109_s3 = inlined_call_operand.vmem [shape: bf16[1,128], index: 3, kind: input, shape index: {}]   ;;  %s1110_s4 = inlined_call_operand.<no memory space> [shape: f32[1,1], index: 4, kind: input, shape index: {}]   ;;  %s1111_s5 = inlined_call_operand.vmem [shape: f32[2,1,256], index: 5, kind: output, shape index: {}]  }
   0x1   :  { %10 = sst [smem:[#allocation2]] %s1110_s4 }
   0x2   :  { %11 = vsyncpa [#allocation4], 0 }
   0x3   :  { %13 = vsyncpa [#allocation4 + $0x1], 0  ;;  %s883_s20 = smov 0   ;;  %s885_s21 = smov 0  }
   0x4   :  { %s887_s22 = smov 0   ;;  %s889_s23 = smov 0  }
   0x5 LB: > { %s902_s4 = sadd.s32 4294967295, %s845_s23   ;;  %s905_s24 = sadd.s32 1, %s845_s23   ;;  %s845_s23 = sphi %s889_s23, %s1119_s23   ;;  %s841_s22 = sphi %s887_s22, %s1118_s22   ;;  %s837_s21 = sphi %s885_s21, %s1117_s21   ;;  %s833_s20 = sphi %s883_s20, %s1116_s20  }
   0x6   : > { %s23_s25 = ssub.s32 %s845_s23, %s905_s24  ;;  %s26_s26 = sadd.s32 1, %s841_s22 }
   0x7   : > { %p24_p0 = scmp.eq.s32.totalorder %s23_s25, 0  ;;  %p33_p1 = scmp.ne.s32.totalorder %s841_s22, %s837_s21 }
   0x8   : > { %p34_p2 = scmp.eq.s32.totalorder %s845_s23, 0  ;;  %p39_p3 = scmp.ne.s32.totalorder %s837_s21, %s833_s20 }
   0x9   : > { %s915_s27 = scalar_select %p24_p0, %s841_s22, %s26_s26  }
   0xa   : > { %p35_p4 = por %p34_p2, %p33_p1  ;;  %p40_p5 = scmp.eq.s32.totalorder %s902_s4, 0 }
   0xb   : > { %p656_p7 = scmp.ge.s32.totalorder %s845_s23, 2 }
   0xc   : > { %p918_p6 = por %p40_p5, %p39_p3 }
   0xd   : > { %181 = sbr.rel (%p656_p7) target bundleno = 54 (0x36), region = 32 }
  0x12   : > { %184 = sbr.rel (!%p35_p4) target bundleno = 54 (0x36), region = 36  ;;  %s185_s29 = sand.u32 (%p35_p4), 1, %s841_s22  }
  0x13   : > { %s658_s30 = sshll.u32 (%p35_p4), %s845_s23, 5  ;;  %s657_s6 = sshll.u32 (%p35_p4), %s185_s29, 8 }
  0x14   : > { %s191_s7 = ssub.s32 (%p35_p4), 38, %s658_s30  ;;  %s928_s11 = scalar_lea.sflag (%p35_p4), [#allocation4], %s185_s29 }
  0x15   : > { %p192_p8 = scmp.lt.s32.totalorder (%p35_p4), %s191_s7, 32  ;;  %s189_s12 = scalar_lea.vmem (%p35_p4), [#allocation3], %s657_s6 }
  0x17   : > { %s1121_s7 = smov (!%p192_p8, %s191_s7), 32 }
  0x18   : > { %s659_s8 = sshll.u32 %s1121_s7, 3 }
  0x19   : > { %s195_s9 = ssub.s32 256, %s659_s8 }
  0x1a   : > { %s196_s10 = sshll.u32 %s195_s9, 4 }
  0x1b   : > { %197 = vsyncadd %s928_s11, %s196_s10  ;;  %p931_p9 = scmp.ne.s32.totalorder %s659_s8, 0  ;;  %s703_s14 = sshll.u32 %s845_s23, 8 }
  0x1c   : > { %s200_s17 = scalar_lea.hbm %s1106_s0, %s703_s14  ;;  %s939_s18 = sshll.u32 %s189_s12, 4  ;;  %s205_s18 = int_to_ptr.vmem [resolvable:$true] %s939_s18 }
  0x1d   : > { %s202_s19 = sshll.u32 %s200_s17, 4  ;;  %s663_s20 = sshll.u32 %s1121_s7, 7  ;;  %s942_s19 = int_to_ptr.hbm [resolvable:$true] %s202_s19 }
  0x1e   : > { %s772_s25 = sshra.s32 %s942_s19, 4  ;;  %s774_s26 = sshrl.u32 %s663_s20, 4  ;;  %s773_s25 = int_to_ptr.hbm [resolvable:$true] %s772_s25 }
  0x1f   : > { %s779_s29 = scalar_lea.hbm %s773_s25, %s774_s26  ;;  %s783_s8 = scalar_lea.hbm %s1106_s0, 304 }
  0x20   : > { %p780_p10 = scmp.ne.s32.totalorder %s773_s25, %s779_s29  ;;  %p784_p13 = scmp.lt.s32.totalorder %s773_s25, %s1106_s0 }
  0x21   : > { %p785_p0 = scmp.lt.s32.totalorder %s783_s8, %s779_s29 }
  0x22   : > { %p781_p11 = pnand %p780_p10, %p931_p9 }
  0x23   : > { %p786_p1 = por %p785_p0, %p784_p13 }
  0x24   : > { %p782_p12 = pneg %p781_p11 }
  0x26   : > { %p787_p2 = pnand %p786_p1, %p782_p12 }
  0x28   : > { %790 = shalt.err (!%p787_p2)
}
  0x29   : > { %s791_s12 = sshra.s32 %s205_s18, 4  ;;  %s847_s15 = smov [#allocation3]   ;;  %s792_s12 = int_to_ptr.vmem [resolvable:$true] %s791_s12 }
  0x2a   : > { %s798_s14 = scalar_lea.vmem %s792_s12, %s774_s26  ;;  %s802_s16 = scalar_lea.vmem %s847_s15, 512 }
  0x2b   : > { %p799_p3 = scmp.ne.s32.totalorder %s792_s12, %s798_s14  ;;  %p804_p7 = scmp.lt.s32.totalorder %s802_s16, %s798_s14 }
  0x2d   : > { %p800_p4 = pnand %p799_p3, %p931_p9 }
  0x2f   : > { %p801_p5 = pneg %p800_p4 }
  0x31   : > { %p806_p8 = pnand %p804_p7, %p801_p5 }
  0x33   : > { %809 = shalt.err (!%p806_p8)
}
  0x34   : > { %s848_s17 = smov 128   ;;  %s849_s25 = smov 8  }
  0x35   : > { %210 = dma.hbm_to_vmem [thread:$0]  (%p931_p9), %s942_s19, %s663_s20, %s205_s18, %s928_s11, %s848_s17, %s848_s17, %s849_s25  }
  0x36 PF: > { %p664_p10 = scmp.ge.s32.totalorder %s845_s23, 1  ;;  %p212_p11 = scmp.lt.s32.totalorder %s845_s23, 3 }
  0x38   : > { %p213_p12 = pnand %p664_p10, %p212_p11 }
  0x39   : > { %s218_s26 = sand.u32 (!%p213_p12), 1, %s837_s21  }
  0x3a   : > { %216 = sbr.rel (%p213_p12) target bundleno = 535 (0x217), region = 40  ;;  %s665_s29 = sshll.u32 (!%p213_p12), %s218_s26, 8 }
  0x3b   : > { %s219_s30 = scalar_lea.sflag (!%p213_p12), [#allocation4], %s218_s26  ;;  %s971_s6 = scalar_lea.vmem (!%p213_p12), [#allocation3], %s665_s29 }
  0x3f   : > { %828 = dma.done.wait (%p918_p6), %s219_s30, 4096  }
  0x40   : > { %830 = vsyncadd (%p918_p6), %s219_s30, 4294963200  ;;  %v711_v0 = vld [vmem:[%s1107_s1 + $0x38] sm:$0xff]  ;;  %v710_v1 = vld [vmem:[%s1107_s1 + $0x30] sm:$0xff]  ;;  %p254_p6 = scmp.lt.s32.totalorder %s902_s4, 1  ;;  %vm581_vm8 = vcmask 1040384  }
  0x41   : > { %374 = vmatpush.bf16.msra.mxu0 %v711_v0  ;;  %713 = vmatpush.bf16.msra.mxu3 %v711_v0  ;;  %v709_v2 = vld [vmem:[%s1107_s1 + $0x28] sm:$0xff]  ;;  %v708_v3 = vld [vmem:[%s1107_s1 + $0x20] sm:$0xff]  ;;  %v707_v4 = vld [vmem:[%s1107_s1 + $0x18] sm:$0xff] }
  0x42   : > { %712 = vmatpush.bf16.msra.mxu1 %v711_v0  ;;  %v706_v5 = vld [vmem:[%s1107_s1 + $0x10] sm:$0xff]  ;;  %v705_v6 = vld [vmem:[%s1107_s1 + $0x8] sm:$0xff]  ;;  %v704_v7 = vld [vmem:[%s1107_s1] sm:$0xff]  ;;  %s1123_s4 = smov (!%p254_p6, %s902_s4), 1 }
  0x43   : > { %v258_v8 = vld [vmem:[%s971_s6] sm:$0xff]  ;;  %v259_v9 = vld [vmem:[%s971_s6 + $0x8] sm:$0xff]  ;;  %v280_v10 = vld [vmem:[%s971_s6 + $0xb0] sm:$0xff]  ;;  %s666_s7 = sshll.u32 %s1123_s4, 1 }
  0x44   : > { %v281_v11 = vld [vmem:[%s971_s6 + $0xb8] sm:$0xff]  ;;  %v270_v12 = vld [vmem:[%s971_s6 + $0x60] sm:$0xff]  ;;  %v271_v13 = vld [vmem:[%s971_s6 + $0x68] sm:$0xff]  ;;  %v290_v14 = vpack.c.bf16 %v259_v9, %v258_v8  ;;  %s257_s13 = scalar_lea.vmem %s1111_s5, %s666_s7 }
  0x45   : > { %375 = vmatpush.bf16.msra.mxu0 %v710_v1  ;;  %715 = vmatpush.bf16.msra.mxu3 %v710_v1  ;;  %v301_v15 = vpack.c.bf16 %v281_v11, %v280_v10  ;;  %v296_v16 = vpack.c.bf16 %v271_v13, %v270_v12  ;;  %v260_v17 = vld [vmem:[%s971_s6 + $0x10] sm:$0xff]  ;;  %v261_v18 = vld [vmem:[%s971_s6 + $0x18] sm:$0xff]  ;;  %v282_v19 = vld [vmem:[%s971_s6 + $0xc0] sm:$0xff] }
  0x46   : > { %714 = vmatpush.bf16.msra.mxu1 %v710_v1  ;;  %v283_v20 = vld [vmem:[%s971_s6 + $0xc8] sm:$0xff]  ;;  %v272_v21 = vld [vmem:[%s971_s6 + $0x70] sm:$0xff]  ;;  %v273_v22 = vld [vmem:[%s971_s6 + $0x78] sm:$0xff]  ;;  %v291_v23 = vpack.c.bf16 %v261_v18, %v260_v17 }
  0x47   : > { %v302_v24 = vpack.c.bf16 %v283_v20, %v282_v19  ;;  %v297_v25 = vpack.c.bf16 %v273_v22, %v272_v21  ;;  %v262_v26 = vld [vmem:[%s971_s6 + $0x20] sm:$0xff]  ;;  %v263_v27 = vld [vmem:[%s971_s6 + $0x28] sm:$0xff]  ;;  %v284_v28 = vld [vmem:[%s971_s6 + $0xd0] sm:$0xff] }
  0x48   : > { %v285_v29 = vld [vmem:[%s971_s6 + $0xd8] sm:$0xff]  ;;  %v292_v30 = vpack.c.bf16 %v263_v27, %v262_v26  ;;  %v274_v32 = vld [vmem:[%s971_s6 + $0x80] sm:$0xff]  ;;  %v275_v33 = vld [vmem:[%s971_s6 + $0x88] sm:$0xff] }
  0x49   : > { %376 = vmatpush.bf16.msra.mxu0 %v709_v2  ;;  %717 = vmatpush.bf16.msra.mxu3 %v709_v2  ;;  %v303_v31 = vpack.c.bf16 %v285_v29, %v284_v28  ;;  %v298_v34 = vpack.c.bf16 %v275_v33, %v274_v32  ;;  %v264_v35 = vld [vmem:[%s971_s6 + $0x30] sm:$0xff]  ;;  %v265_v36 = vld [vmem:[%s971_s6 + $0x38] sm:$0xff]  ;;  %v286_v37 = vld [vmem:[%s971_s6 + $0xe0] sm:$0xff] }
  0x4a   : > { %716 = vmatpush.bf16.msra.mxu1 %v709_v2  ;;  %v287_v38 = vld [vmem:[%s971_s6 + $0xe8] sm:$0xff]  ;;  %v293_v39 = vpack.c.bf16 %v265_v36, %v264_v35  ;;  %v276_v41 = vld [vmem:[%s971_s6 + $0x90] sm:$0xff]  ;;  %v277_v42 = vld [vmem:[%s971_s6 + $0x98] sm:$0xff] }
  0x4b   : > { %v304_v40 = vpack.c.bf16 %v287_v38, %v286_v37  ;;  %v299_v43 = vpack.c.bf16 %v277_v42, %v276_v41  ;;  %v266_v44 = vld [vmem:[%s971_s6 + $0x40] sm:$0xff]  ;;  %v267_v45 = vld [vmem:[%s971_s6 + $0x48] sm:$0xff]  ;;  %v288_v46 = vld [vmem:[%s971_s6 + $0xf0] sm:$0xff] }
  0x4c   : > { %v289_v47 = vld [vmem:[%s971_s6 + $0xf8] sm:$0xff]  ;;  %v294_v48 = vpack.c.bf16 %v267_v45, %v266_v44  ;;  %v278_v50 = vld [vmem:[%s971_s6 + $0xa0] sm:$0xff]  ;;  %v279_v51 = vld [vmem:[%s971_s6 + $0xa8] sm:$0xff] }
  0x4d   : > { %377 = vmatpush.bf16.msra.mxu0 %v708_v3  ;;  %719 = vmatpush.bf16.msra.mxu3 %v708_v3  ;;  %v305_v49 = vpack.c.bf16 %v289_v47, %v288_v46  ;;  %v300_v52 = vpack.c.bf16 %v279_v51, %v278_v50  ;;  %v268_v53 = vld [vmem:[%s971_s6 + $0x50] sm:$0xff]  ;;  %v269_v54 = vld [vmem:[%s971_s6 + $0x58] sm:$0xff]  ;;  %v1036_v58 = vld [vmem:[%s1108_s2] ss:$0 sm:$0xff]  ;;  %s512_s6 = sld [smem:[#allocation2]] }
  0x4e   : > { %718 = vmatpush.bf16.msra.mxu1 %v708_v3  ;;  %v295_v55 = vpack.c.bf16 %v269_v54, %v268_v53 }
  0x51   : > { %378 = vmatpush.bf16.msra.mxu0 %v707_v4  ;;  %721 = vmatpush.bf16.msra.mxu3 %v707_v4 }
  0x52   : > { %720 = vmatpush.bf16.msra.mxu1 %v707_v4 }
  0x55   : > { %379 = vmatpush.bf16.msra.mxu0 %v706_v5  ;;  %723 = vmatpush.bf16.msra.mxu3 %v706_v5 }
  0x56   : > { %722 = vmatpush.bf16.msra.mxu1 %v706_v5 }
  0x59   : > { %380 = vmatpush.bf16.msra.mxu0 %v705_v6  ;;  %725 = vmatpush.bf16.msra.mxu3 %v705_v6 }
  0x5a   : > { %724 = vmatpush.bf16.msra.mxu1 %v705_v6 }
  0x5d   : > { %381 = vmatpush.bf16.msra.mxu0 %v704_v7  ;;  %727 = vmatpush.bf16.msra.mxu3 %v704_v7 }
  0x5e   : > { %726 = vmatpush.bf16.msra.mxu1 %v704_v7 }
  0x60   : > { %382 = vmatmul.bf16.vlgmr.msra.gmra.mxu0 %v290_v14  ;;  %437 = vmatmul.bf16.vlgmr.msra.gmra.mxu3 %v301_v15 }
  0x61   : > { %412 = vmatmul.bf16.vlgmr.msra.gmra.mxu1 %v296_v16 }
  0x70   : > { %387 = vmatmul.bf16.gmra.mxu0 %v291_v23  ;;  %442 = vmatmul.bf16.gmra.mxu3 %v302_v24 }
  0x71   : > { %417 = vmatmul.bf16.gmra.mxu1 %v297_v25 }
  0x80   : > { %392 = vmatmul.bf16.gmra.mxu0 %v292_v30  ;;  %447 = vmatmul.bf16.gmra.mxu3 %v303_v31 }
  0x81   : > { %422 = vmatmul.bf16.gmra.mxu1 %v298_v34 }
  0x90   : > { %397 = vmatmul.bf16.gmra.mxu0 %v293_v39  ;;  %452 = vmatmul.bf16.gmra.mxu3 %v304_v40 }
  0x91   : > { %427 = vmatmul.bf16.gmra.mxu1 %v299_v43 }
  0xa0   : > { %402 = vmatmul.bf16.gmra.mxu0 %v294_v48  ;;  %457 = vmatmul.bf16.gmra.mxu3 %v305_v49 }
  0xa1   : > { %432 = vmatmul.bf16.gmra.mxu1 %v300_v52 }
  0xb0   : > { %407 = vmatmul.bf16.gmra.mxu0 %v295_v55 }
  0xdd   : > { %v383_v56 = vpop.f32.mrf.mxu0 }
  0xde   : > { %v413_v57 = vpop.f32.mrf.mxu1  ;;  %v384_v59 = vadd.f32 %v1036_v58, %v383_v56 }
  0xdf   : > { %v414_v21 = vadd.f32 %v1036_v58, %v413_v57 }
  0xe0   : > { %v463_v62 = vmax.f32 %v384_v59, 0.0 }
  0xe1   : > { %v475_v29 = vmax.f32 %v414_v21, 0.0 }
  0xe3   : > { %v438_v60 = vpop.f32.mrf.mxu3 }
  0xe4   : > { %v439_v2 = vadd.f32 %v1036_v58, %v438_v60 }
  0xe5   : > { %v385_v61 = vpop.f32.mrf.mxu0 }
  0xe6   : > { %v386_v63 = vadd.f32 %v1036_v58, %v385_v61  ;;  %v415_v0 = vpop.f32.mrf.mxu1  ;;  %v485_v7 = vmax.f32 %v439_v2, 0.0 }
  0xe7   : > { %v416_v22 = vadd.f32 %v1036_v58, %v415_v0 }
  0xe8   : > { %v464_v1 = vmax.f32 %v386_v63, 0.0 }
  0xe9   : > { %v476_v30 = vmax.f32 %v416_v22, 0.0 }
  0xea   : > { %v1041_v3 = vpack.c.bf16 %v464_v1, %v463_v62 }
  0xeb   : > { %v440_v4 = vpop.f32.mrf.mxu3  ;;  %v502_v35 = vpack.c.bf16 %v476_v30, %v475_v29 }
  0xec   : > { %v441_v5 = vadd.f32 %v1036_v58, %v440_v4 }
  0xed   : > { %v388_v6 = vpop.f32.mrf.mxu0 }
  0xee   : > { %v486_v8 = vmax.f32 %v441_v5, 0.0  ;;  %v418_v9 = vpop.f32.mrf.mxu1  ;;  %v389_v11 = vadd.f32 %v1036_v58, %v388_v6 }
  0xef   : > { %v419_v13 = vadd.f32 %v1036_v58, %v418_v9 }
  0xf0   : > { %v1044_v10 = vpack.c.bf16 %v486_v8, %v485_v7  ;;  %v465_v15 = vmax.f32 %v389_v11, 0.0 }
  0xf1   : > { %v477_v18 = vmax.f32 %v419_v13, 0.0 }
  0xf3   : > { %v443_v12 = vpop.f32.mrf.mxu3 }
  0xf4   : > { %v444_v24 = vadd.f32 %v1036_v58, %v443_v12 }
  0xf5   : > { %v390_v14 = vpop.f32.mrf.mxu0 }
  0xf6   : > { %v391_v16 = vadd.f32 %v1036_v58, %v390_v14  ;;  %v420_v17 = vpop.f32.mrf.mxu1  ;;  %v487_v32 = vmax.f32 %v444_v24, 0.0 }
  0xf7   : > { %v421_v19 = vadd.f32 %v1036_v58, %v420_v17 }
  0xf8   : > { %v466_v20 = vmax.f32 %v391_v16, 0.0 }
  0xf9   : > { %v478_v23 = vmax.f32 %v421_v19, 0.0 }
  0xfa   : > { %v1053_v25 = vpack.c.bf16 %v466_v20, %v465_v15 }
  0xfb   : > { %v445_v26 = vpop.f32.mrf.mxu3  ;;  %v503_v27 = vpack.c.bf16 %v478_v23, %v477_v18 }
  0xfc   : > { %v446_v28 = vadd.f32 %v1036_v58, %v445_v26 }
  0xfd   : > { %v393_v31 = vpop.f32.mrf.mxu0  ;;  %514 = vmatpush.bf16.xpose.msrb.mxu1 %v503_v27 }
  0xfe   : > { %v488_v33 = vmax.f32 %v446_v28, 0.0  ;;  %v394_v36 = vadd.f32 %v1036_v58, %v393_v31  ;;  %v423_v48 = vpop.f32.mrf.mxu1 }
 0x100   : > { %v508_v34 = vpack.c.bf16 %v488_v33, %v487_v32  ;;  %v467_v39 = vmax.f32 %v394_v36, 0.0 }
 0x103   : > { %v448_v37 = vpop.f32.mrf.mxu3 }
 0x104   : > { %v449_v12 = vadd.f32 %v1036_v58, %v448_v37 }
 0x105   : > { %v395_v38 = vpop.f32.mrf.mxu0  ;;  %515 = vmatpush.bf16.xpose.msrb.mxu1 %v502_v35 }
 0x106   : > { %v396_v40 = vadd.f32 %v1036_v58, %v395_v38  ;;  %v425_v52 = vpop.f32.mrf.mxu1  ;;  %v489_v17 = vmax.f32 %v449_v12, 0.0 }
 0x108   : > { %v468_v41 = vmax.f32 %v396_v40, 0.0  ;;  %v426_v40 = vadd.f32 %v1036_v58, %v425_v52 }
 0x10a   : > { %v498_v42 = vpack.c.bf16 %v468_v41, %v467_v39  ;;  %v424_v39 = vadd.f32 %v1036_v58, %v423_v48 }
 0x10b   : > { %v450_v43 = vpop.f32.mrf.mxu3 }
 0x10c   : > { %v451_v7 = vadd.f32 %v1036_v58, %v450_v43  ;;  %v480_v43 = vmax.f32 %v426_v40, 0.0 }
 0x10d   : > { %v398_v44 = vpop.f32.mrf.mxu0 }
 0x10e   : > { %v428_v60 = vpop.f32.mrf.mxu1  ;;  %v490_v16 = vmax.f32 %v451_v7, 0.0  ;;  %v399_v21 = vadd.f32 %v1036_v58, %v398_v44  ;;  %v495_v44 = vld [vmem:[%s1109_s3] sm:$0x1] }
 0x10f   : > { %v429_v35 = vadd.f32 %v1036_v58, %v428_v60 }
 0x110   : > { %v509_v20 = vpack.c.bf16 %v490_v16, %v489_v17  ;;  %v469_v26 = vmax.f32 %v399_v21, 0.0 }
 0x111   : > { %v481_v38 = vmax.f32 %v429_v35, 0.0 }
 0x113   : > { %v453_v45 = vpop.f32.mrf.mxu3 }
 0x114   : > { %v454_v63 = vadd.f32 %v1036_v58, %v453_v45 }
 0x115   : > { %v400_v46 = vpop.f32.mrf.mxu0 }
 0x116   : > { %v491_v4 = vmax.f32 %v454_v63, 0.0  ;;  %v430_v11 = vpop.f32.mrf.mxu1  ;;  %v401_v22 = vadd.f32 %v1036_v58, %v400_v46 }
 0x117   : > { %v431_v36 = vadd.f32 %v1036_v58, %v430_v11 }
 0x118   : > { %v470_v27 = vmax.f32 %v401_v22, 0.0 }
 0x11a   : > { %v499_v28 = vpack.c.bf16 %v470_v27, %v469_v26 }
 0x11b   : > { %v455_v47 = vpop.f32.mrf.mxu3 }
 0x11c   : > { %v456_v61 = vadd.f32 %v1036_v58, %v455_v47 }
 0x11d   : > { %v403_v49 = vpop.f32.mrf.mxu0 }
 0x11e   : > { %v492_v1 = vmax.f32 %v456_v61, 0.0  ;;  %v404_v13 = vadd.f32 %v1036_v58, %v403_v49  ;;  %v433_v24 = vpop.f32.mrf.mxu1 }
 0x11f   : > { %v434_v30 = vadd.f32 %v1036_v58, %v433_v24 }
 0x120   : > { %v510_v9 = vpack.c.bf16 %v492_v1, %v491_v4  ;;  %v471_v18 = vmax.f32 %v404_v13, 0.0 }
 0x121   : > { %v483_v32 = vmax.f32 %v434_v30, 0.0 }
 0x123   : > { %v458_v50 = vpop.f32.mrf.mxu3 }
 0x124   : > { %v459_v53 = vadd.f32 %v1036_v58, %v458_v50 }
 0x125   : > { %v405_v51 = vpop.f32.mrf.mxu0 }
 0x126   : > { %v493_v57 = vmax.f32 %v459_v53, 0.0  ;;  %v406_v14 = vadd.f32 %v1036_v58, %v405_v51  ;;  %v435_v29 = vpop.f32.mrf.mxu1 }
 0x127   : > { %v436_v31 = vadd.f32 %v1036_v58, %v435_v29 }
 0x128   : > { %v472_v19 = vmax.f32 %v406_v14, 0.0 }
 0x129   : > { %v484_v33 = vmax.f32 %v436_v31, 0.0 }
 0x12a   : > { %v500_v23 = vpack.c.bf16 %v472_v19, %v471_v18 }
 0x12b   : > { %v460_v54 = vpop.f32.mrf.mxu3  ;;  %v506_v37 = vpack.c.bf16 %v484_v33, %v483_v32 }
 0x12c   : > { %v461_v55 = vadd.f32 %v1036_v58, %v460_v54 }
 0x12d   : > { %v408_v56 = vpop.f32.mrf.mxu0 }
 0x12e   : > { %v494_v59 = vmax.f32 %v461_v55, 0.0  ;;  %v409_v0 = vadd.f32 %v1036_v58, %v408_v56 }
 0x130   : > { %v511_v62 = vpack.c.bf16 %v494_v59, %v493_v57  ;;  %v473_v5 = vmax.f32 %v409_v0, 0.0 }
 0x132   : > { %527 = vmatpush.bf16.xpose.msra.mxu2 %v511_v62 }
 0x135   : > { %v410_v2 = vpop.f32.mrf.mxu0 }
 0x136   : > { %v411_v6 = vadd.f32 %v1036_v58, %v410_v2 }
 0x138   : > { %v474_v8 = vmax.f32 %v411_v6, 0.0 }
 0x13a   : > { %528 = vmatpush.bf16.xpose.msra.mxu2 %v510_v9  ;;  %v501_v15 = vpack.c.bf16 %v474_v8, %v473_v5  ;;  %v584_v8 = vlaneseq }
 0x13c   : > { %516 = vmatpush.bf16.xpose.msrb.mxu1 %v501_v15  ;;  %vm586_vm9 = vcmp.lt.s32.totalorder %v584_v8, 256 }
 0x142   : > { %529 = vmatpush.bf16.xpose.msra.mxu2 %v509_v20 }
 0x144   : > { %517 = vmatpush.bf16.xpose.msrb.mxu1 %v500_v23 }
 0x14a   : > { %530 = vmatpush.bf16.xpose.msra.mxu2 %v508_v34  ;;  %v482_v34 = vmax.f32 %v431_v36, 0.0 }
 0x14c   : > { %518 = vmatpush.bf16.xpose.msrb.mxu1 %v499_v28  ;;  %v505_v41 = vpack.c.bf16 %v482_v34, %v481_v38 }
 0x152   : > { %531 = vmatpush.bf16.xpose.msra.mxu2 %v1044_v10  ;;  %v479_v10 = vmax.f32 %v424_v39, 0.0 }
 0x154   : > { %519 = vmatpush.bf16.xpose.msrb.mxu1 %v498_v42  ;;  %v504_v42 = vpack.c.bf16 %v480_v43, %v479_v10 }
 0x15a   : > { %532 = vmatpush.bf16.xpose.msra.mxu2 %v506_v37 }
 0x15c   : > { %520 = vmatpush.bf16.xpose.msrb.mxu1 %v1053_v25  ;;  %v513_v25 = vstv %s512_s6 }
 0x162   : > { %533 = vmatpush.bf16.xpose.msra.mxu2 %v505_v41 }
 0x164   : > { %521 = vmatpush.bf16.xpose.msrb.mxu1 %v1041_v3 }
 0x16a   : > { %534 = vmatpush.bf16.xpose.msra.mxu2 %v504_v42 }
 0x16b   : > { %522 = vmatmul.bf16.vlgmr.msrb.gmra.mxu1 %v495_v44 }
 0x171   : > { %535 = vmatmul.bf16.vlgmr.msra.gmra.mxu2 %v495_v44 }
 0x1e8   : > { %v523_v45 = vpop.f32.mrf.mxu1 }
 0x1e9   : > { %v524_v46 = vadd.f32 %v523_v45, %v513_v25 }
 0x1eb   : > { %v699_v47 = vmul.f32 -1.442695, %v524_v46 }
 0x1ed   : > { %764 = vpow2.f32 %v699_v47 }
 0x1f0   : > { %v525_v58 = vpop.f32.mrf.mxu1 }
 0x1f3   : > { %v765_v48 = vpop.eup %764 }
 0x1f4   : > { %v546_v49 = vadd.f32 1.0, %v765_v48  ;;  %v536_v50 = vpop.f32.mrf.mxu2 }
 0x1f5   : > { %v537_v3 = vadd.f32 %v536_v50, %v513_v25 }
 0x1f6   : > { %766 = vrcp.f32 %v546_v49  ;;  %vm553_vm0 = vweird.f32 %v546_v49  ;;  %v557_v63 = vand.u32 2147483647, %v546_v49  ;;  %v559_v0 = vand.u32 2147483648, %v546_v49 }
 0x1f7   : > { %v700_v51 = vmul.f32 -1.442695, %v537_v3 }
 0x1f8   : > { %v560_v9 = vor.u32 1.1754944e-38, %v559_v0  ;;  %vm558_vm6 = vcmp.eq.f32.partialorder %v557_v63, 8.507059e+37 }
 0x1f9   : > { %768 = vpow2.f32 %v700_v51 }
 0x1fc   : > { %v538_v52 = vpop.f32.mrf.mxu2  ;;  %v767_v53 = vpop.eup %766 }
 0x1fd   : > { %v549_v56 = vmul.f32 %v767_v53, %v546_v49  ;;  %vm554_vm1 = vweird.f32 %v767_v53 }
 0x1fe   : > { %vm1084_vm3 = vmor %vm553_vm0, %vm554_vm1 }
 0x1ff   : > { %v769_v54 = vpop.eup %768  ;;  %v550_v57 = vsub.f32 1.0, %v549_v56 }
 0x200   : > { %v547_v55 = vadd.f32 1.0, %v769_v54 }
 0x201   : > { %v551_v60 = vmul.f32 %v767_v53, %v550_v57 }
 0x202   : > { %770 = vrcp.f32 %v547_v55  ;;  %v574_v1 = vand.u32 2147483648, %v547_v55  ;;  %v572_v5 = vand.u32 2147483647, %v547_v55  ;;  %vm568_vm4 = vweird.f32 %v547_v55 }
 0x203   : > { %v552_v2 = vadd.f32 %v767_v53, %v551_v60 }
 0x204   : > { %v575_v11 = vor.u32 1.1754944e-38, %v574_v1  ;;  %vm573_vm7 = vcmp.eq.f32.partialorder %v572_v5, 8.507059e+37 }
 0x205   : > { %v556_v12 = vsel %vm1084_vm3, %v767_v53, %v552_v2 }
 0x206   : > { %v561_v16 = vsel %vm558_vm6, %v560_v9, %v556_v12 }
 0x208   : > { %v771_v59 = vpop.eup %770 }
 0x209   : > { %v564_v61 = vmul.f32 %v771_v59, %v547_v55  ;;  %vm569_vm2 = vweird.f32 %v771_v59 }
 0x20a   : > { %vm570_vm5 = vmor %vm568_vm4, %vm569_vm2 }
 0x20b   : > { %v565_v62 = vsub.f32 1.0, %v564_v61 }
 0x20d   : > { %v566_v4 = vmul.f32 %v771_v59, %v565_v62 }
 0x20f   : > { %v567_v7 = vadd.f32 %v771_v59, %v566_v4 }
 0x211   : > { %v571_v13 = vsel %vm570_vm5, %v771_v59, %v567_v7 }
 0x212   : > { %v576_v14 = vsel %vm573_vm7, %v575_v11, %v571_v13 }
 0x213   : > { %v580_v15 = vrot.slane %v576_v14, 7 }
 0x215   : > { %v582_v17 = vsel %vm581_vm8, %v561_v16, %v580_v15 }
 0x216   : > { %588 = vst.msk [vmem:[%s257_s13] sm:$0x3] %vm586_vm9, %v582_v17 }
 0x217 PF: > { %p16_p9 = scmp.ge.s32.totalorder %s905_s24, 4   ;;  %s1116_s20 = smov %s837_s21 }
 0x218   : > { %s1117_s21 = smov %s841_s22  ;;  %s1118_s22 = smov %s915_s27 }
 0x219   : > { %s1119_s23 = smov %s905_s24  ;;  %18 = sbr.rel (!%p16_p9) target bundleno = 5 (0x5), region = 80 }
 0x21e   :  { %608 = vsyncpa [#allocation4], 1 }
 0x21f   :  { %610 = vsyncpa [#allocation4 + $0x1], 1 }

</bundles_post_ra>
